<compile_context>
chip_gen: v7x
topology: tpu7x:2x2x1
jax: 0.10.0
libtpu: 0.0.40
codegen_flags: <defaults>
</compile_context>

<pallas_src>
import math

import jax
import jax.numpy as jnp
from jax import lax
from jax.experimental import pallas as pl
from jax.experimental.pallas import tpu as pltpu


# ---------------------------------------------------------------------------
# Kernel
# ---------------------------------------------------------------------------
def lora_linear_kernel(x_ref, w_ref, mid_ref, bt_ref, o_ref, acc_ref):
    # x: (tm, tk)   w: (tn, tk)  [native (O, K) layout]
    # mid: (tm, r) f32 = scaling * (x @ A.T), precomputed in the wrapper
    # bt: (r, tn)   o: (tm, tn)   acc: (tm, tn) f32 scratch
    k = pl.program_id(2)

    # Base path: x @ W.T for this tile.  W is in native layout, so contract
    # both operands on their last dim (trans_b matmul) -> MXU, f32 accumulate.
    part = lax.dot_general(
        x_ref[...], w_ref[...],
        dimension_numbers=(((1,), (1,)), ((), ())),
        preferred_element_type=jnp.float32)

    @pl.when(k == 0)
    def _():
        acc_ref[...] = part            # direct store: no zero-init + RMW

    @pl.when(k > 0)
    def _():
        acc_ref[...] += part

    @pl.when(k == pl.num_programs(2) - 1)
    def _():
        # Rank-r LoRA correction, applied once per output tile (f32 all the way).
        lora = jnp.dot(mid_ref[...], bt_ref[...].astype(jnp.float32),
                       preferred_element_type=jnp.float32)
        o_ref[...] = (acc_ref[...] + lora).astype(o_ref.dtype)


# ---------------------------------------------------------------------------
# Tile planning helpers
# ---------------------------------------------------------------------------
def _round_up(v, m):
    return ((v + m - 1) // m) * m


def _plan_dim(dim, candidates, sublane=False):
    """Return (padded_dim, tile) for one matmul dimension.

    Tiles are either 128-aligned (8-aligned for sublane dims) or equal to the
    full (possibly padded) dimension, so every BlockSpec satisfies the (8,128)
    rule and the output spec stays lane-dense whenever the dim allows it.
    """
    if dim % 128 == 0 and dim <= candidates[0]:
        return dim, dim                      # single full-extent tile
    for c in candidates:
        if dim % c == 0:
            return dim, c
    if dim <= candidates[-1] or (sublane and dim % 8 == 0 and dim <= 1024):
        return dim, dim                      # small dim: full block is legal
    pad = _round_up(dim, 128)                # large misaligned dim: pad to 128
    for c in candidates:
        if pad % c == 0:
            return pad, c
    return pad, 128


def _vmem_capacity_bytes():
    try:
        return int(pltpu.get_tpu_info().vmem_capacity_bytes)
    except Exception:
        return 64 * 1024 * 1024              # conservative fallback (v7x per-TC)


def _vmem_working_bytes(tm, tn, tk, r, x_isz, w_isz, b_isz, o_isz):
    """Double-buffered pipeline working set + f32 accumulator scratch."""
    lane_r = max(_round_up(r, 128), 128)
    dbuf = 2 * (tm * tk * x_isz              # x tile
                + tn * tk * w_isz            # W tile
                + tm * lane_r * 4            # mid tile (f32, lane-padded)
                + 8 * max(tn, 128) * b_isz   # B.T tile (sublane-padded)
                + tm * tn * o_isz)           # out tile
    return dbuf + tm * tn * 4                # f32 accumulator


# ---------------------------------------------------------------------------
# Wrapper
# ---------------------------------------------------------------------------
def lora_linear(x, weight, lora_A, lora_B, scaling):
    """x: [..., in_features] -> [..., out_features]."""
    out_features, in_features = weight.shape
    r = lora_A.shape[0]
    lead_shape = x.shape[:-1]
    x2d = x.reshape(-1, in_features)
    M, K, O = x2d.shape[0], in_features, out_features

    x_isz = jnp.dtype(x.dtype).itemsize
    w_isz = jnp.dtype(weight.dtype).itemsize
    b_isz = jnp.dtype(lora_B.dtype).itemsize

    # --- LoRA "mid" projection hoisted out of the tile grid ----------------
    # Skinny 2*M*K*r-FLOP matmul done once (XLA); folding `scaling` here means
    # the kernel has no scalar multiply and no rank-r pass per (j, k) step.
    mid = (jnp.dot(x2d, lora_A.T, preferred_element_type=jnp.float32)
           * jnp.float32(scaling))
    b_t = lora_B.T                            # (r, O): tiny, negligible traffic

    # --- Tile planning -------------------------------------------------------
    tk_top = 2048 if max(x_isz, w_isz) <= 2 else 1024   # bf16 -> longer K tiles
    tm_cands = (512, 256, 128)
    tn_cands = (1024, 512, 256, 128)
    tk_cands = tuple(t for t in (2048, 1024, 512, 256, 128) if t <= tk_top)

    M_pad, tm = _plan_dim(M, tm_cands, sublane=True)
    O_pad, tn = _plan_dim(O, tn_cands)
    K_pad, tk = _plan_dim(K, tk_cands)

    # Keep the double-buffered working set inside ~75% of this chip's VMEM
    # (v7x ~48 MiB of 64; v5e/v6e ~96 MiB of 128) and raise the scoped limit.
    budget = (_vmem_capacity_bytes() * 3) // 4
    while _vmem_working_bytes(tm, tn, tk, r, x_isz, w_isz, b_isz, x_isz) > budget:
        if tk >= 256 and (tk // 2) % 128 == 0 and K_pad % (tk // 2) == 0:
            tk //= 2
        elif tn >= 256 and (tn // 2) % 128 == 0 and O_pad % (tn // 2) == 0:
            tn //= 2
        elif tm >= 16 and (tm // 2) % 8 == 0 and M_pad % (tm // 2) == 0:
            tm //= 2
        else:
            break
    vmem_limit = int(min(budget, 100 * 1024 * 1024))

    # Guarantee >= 2 parallel (i, j) tiles so both v7x TensorCores get work.
    if (M_pad // tm) * (O_pad // tn) < 2:
        if tn % 256 == 0:
            tn //= 2
        elif tm % 16 == 0 and tm > 8:
            tm //= 2

    # --- Padding (only when a dim is misaligned; aligned case is zero-copy) --
    if M_pad != M:
        x2d = jnp.pad(x2d, ((0, M_pad - M), (0, 0)))
        mid = jnp.pad(mid, ((0, M_pad - M), (0, 0)))
    if K_pad != K:
        x2d = jnp.pad(x2d, ((0, 0), (0, K_pad - K)))
        weight = jnp.pad(weight, ((0, 0), (0, K_pad - K)))
    if O_pad != O:
        weight = jnp.pad(weight, ((0, O_pad - O), (0, 0)))
        b_t = jnp.pad(b_t, ((0, 0), (0, O_pad - O)))

    grid = (M_pad // tm, O_pad // tn, K_pad // tk)    # K innermost: acc resident

    cost = pl.CostEstimate(
        flops=2 * M_pad * K_pad * O_pad + 2 * M_pad * r * O_pad,
        transcendentals=0,
        bytes_accessed=int(
            x2d.size * x_isz * grid[1]                 # x re-read per N tile
            + weight.size * w_isz * grid[0]            # W re-read per M tile
            + mid.size * 4
            + b_t.size * b_isz
            + M_pad * O_pad * x_isz),                  # output write
    )

    out = pl.pallas_call(
        lora_linear_kernel,
        out_shape=jax.ShapeDtypeStruct((M_pad, O_pad), x.dtype),
        grid_spec=pltpu.PrefetchScalarGridSpec(
            num_scalar_prefetch=0,
            grid=grid,
            in_specs=[
                pl.BlockSpec((tm, tk), lambda i, j, k: (i, k)),   # x
                pl.BlockSpec((tn, tk), lambda i, j, k: (j, k)),   # W (native O,K)
                pl.BlockSpec((tm, r), lambda i, j, k: (i, 0)),    # mid (f32)
                pl.BlockSpec((r, tn), lambda i, j, k: (0, j)),    # B.T
            ],
            out_specs=pl.BlockSpec((tm, tn), lambda i, j, k: (i, j)),
            scratch_shapes=[
                pltpu.VMEM((tm, tn), jnp.float32),    # f32 accumulator
            ],
        ),
        compiler_params=pltpu.CompilerParams(
            dimension_semantics=("parallel", "parallel", "arbitrary"),
            vmem_limit_bytes=vmem_limit),
        cost_estimate=cost,
    )(x2d, weight, mid, b_t)

    if M_pad != M or O_pad != O:
        out = out[:M, :O]
    return out.reshape(*lead_shape, O)


# ---------------------------------------------------------------------------
# Parameter init mirroring the PyTorch module's __init__ (deterministic)
# ---------------------------------------------------------------------------
def init_lora_linear_params(key, in_features, out_features, r=4):
    k_w, k_a = jax.random.split(key)
    # kaiming_uniform_(a=sqrt(5)) -> bound = 1/sqrt(fan_in)
    bound_w = 1.0 / math.sqrt(in_features)
    weight = jax.random.uniform(k_w, (out_features, in_features),
                                minval=-bound_w, maxval=bound_w,
                                dtype=jnp.float32)
    lora_A = jax.random.uniform(k_a, (r, in_features),
                                minval=-bound_w, maxval=bound_w,
                                dtype=jnp.float32) * 0.0001
    lora_B = jnp.zeros((out_features, r), dtype=jnp.float32)
    return weight, lora_A, lora_B


def _reference(x, weight, lora_A, lora_B, scaling):
    return x @ weight.T + ((x @ lora_A.T) @ lora_B.T) * scaling


if __name__ == "__main__":
    key = jax.random.PRNGKey(0)
    k_params, k_x, k_params2, k_x2, k_b2 = jax.random.split(key, 5)

    # --- Small test at module-implied shapes -------------------------------
    batch, seq = 2, 8
    in_features, out_features, r, alpha = 32, 32, 4, 4.0
    scaling = alpha / r

    weight, lora_A, lora_B = init_lora_linear_params(
        k_params, in_features, out_features, r=r)
    x = jax.random.normal(k_x, (batch, seq, in_features), dtype=jnp.float32)

    out = lora_linear(x, weight, lora_A, lora_B, scaling)
    out = jax.block_until_ready(out)
    ref = _reference(x, weight, lora_A, lora_B, scaling)
    assert out.shape == (batch, seq, out_features)
    assert jnp.allclose(out, ref, atol=1e-5, rtol=1e-5)

    # --- Larger test that exercises the tiled grid (multi-step M/N/K) ------
    b2, s2, in2, out2 = 2, 128, 1536, 384
    w2, a2, _ = init_lora_linear_params(k_params2, in2, out2, r=r)
    # Give lora_B nonzero values so the LoRA path is actually checked.
    b2_mat = jax.random.normal(k_b2, (out2, r), dtype=jnp.float32) * 0.1
    x2 = jax.random.normal(k_x2, (b2, s2, in2), dtype=jnp.float32)

    out_big = lora_linear(x2, w2, a2, b2_mat, scaling)
    out_big = jax.block_until_ready(out_big)
    ref_big = _reference(x2, w2, a2, b2_mat, scaling)
    assert out_big.shape == (b2, s2, out2)
    assert jnp.allclose(out_big, ref_big, atol=5e-4, rtol=1e-4)

    print("KERNEL_OK")
</pallas_src>

<mosaic_0001>
module attributes {stable_mosaic.version = 11 : i64} {
  func.func @lora_linear_kernel(%arg0: i32, %arg1: i32, %arg2: i32, %arg3: memref<8x32xf32, #tpu.memory_space<vmem>>, %arg4: memref<32x32xf32, #tpu.memory_space<vmem>>, %arg5: memref<8x4xf32, #tpu.memory_space<vmem>>, %arg6: memref<4x32xf32, #tpu.memory_space<vmem>>, %arg7: memref<8x32xf32, #tpu.memory_space<vmem>>, %arg8: memref<8x32xf32, #tpu.memory_space<vmem>>) attributes {dimension_semantics = [#tpu.dimension_semantics<parallel>, #tpu.dimension_semantics<parallel>, #tpu.dimension_semantics<arbitrary>], iteration_bounds = array<i64: 2, 1, 1>, scalar_prefetch = 0 : i64, scratch_operands = 1 : i64, tpu.core_type = #tpu.core_type<tc>, window_params = [{transform_indices = @transform_0, window_bounds = array<i64: 8, 32>}, {transform_indices = @transform_1, window_bounds = array<i64: 32, 32>}, {transform_indices = @transform_2, window_bounds = array<i64: 8, 4>}, {transform_indices = @transform_3, window_bounds = array<i64: 4, 32>}, {transform_indices = @transform_4, window_bounds = array<i64: 8, 32>}]} {
    %c0 = arith.constant 0 : index
    %c0_0 = arith.constant 0 : index
    %0 = vector.load %arg3[%c0, %c0_0] : memref<8x32xf32, #tpu.memory_space<vmem>>, vector<8x32xf32>
    %c0_1 = arith.constant 0 : index
    %c0_2 = arith.constant 0 : index
    %1 = vector.load %arg4[%c0_1, %c0_2] : memref<32x32xf32, #tpu.memory_space<vmem>>, vector<32x32xf32>
    %cst = arith.constant dense<0.000000e+00> : vector<8x32xf32>
    %2 = tpu.matmul %0, %1, %cst {dimension_numbers = #tpu.dot_dimension_numbers<[1], [1], [0], [0], [0, 0, 1, 0], [], []>} : vector<8x32xf32>, vector<32x32xf32>, vector<8x32xf32> -> vector<8x32xf32>
    %c0_i32 = arith.constant 0 : i32
    %3 = arith.cmpi eq, %arg2, %c0_i32 : i32
    %4 = arith.extui %3 : i1 to i32
    %c0_i32_3 = arith.constant 0 : i32
    %5 = arith.cmpi ne, %4, %c0_i32_3 : i32
    scf.if %5 {
      %c0_8 = arith.constant 0 : index
      %c0_9 = arith.constant 0 : index
      %12 = vector.load %arg8[%c0_8, %c0_9] : memref<8x32xf32, #tpu.memory_space<vmem>>, vector<8x32xf32>
      tpu.vector_store %arg8[%c0_8, %c0_9], %2 {strides = array<i32>} : memref<8x32xf32, #tpu.memory_space<vmem>>, vector<8x32xf32>,
    } else {
    }
    %c0_i32_4 = arith.constant 0 : i32
    %6 = arith.cmpi sgt, %arg2, %c0_i32_4 : i32
    %7 = arith.extui %6 : i1 to i32
    %c0_i32_5 = arith.constant 0 : i32
    %8 = arith.cmpi ne, %7, %c0_i32_5 : i32
    scf.if %8 {
      %c0_8 = arith.constant 0 : index
      %c0_9 = arith.constant 0 : index
      %12 = vector.load %arg8[%c0_8, %c0_9] : memref<8x32xf32, #tpu.memory_space<vmem>>, vector<8x32xf32>
      %13 = arith.addf %12, %2 : vector<8x32xf32>
      %c0_10 = arith.constant 0 : index
      %c0_11 = arith.constant 0 : index
      %14 = vector.load %arg8[%c0_10, %c0_11] : memref<8x32xf32, #tpu.memory_space<vmem>>, vector<8x32xf32>
      tpu.vector_store %arg8[%c0_10, %c0_11], %13 {strides = array<i32>} : memref<8x32xf32, #tpu.memory_space<vmem>>, vector<8x32xf32>,
    } else {
    }
    %c0_i32_6 = arith.constant 0 : i32
    %9 = arith.cmpi eq, %arg2, %c0_i32_6 : i32
    %10 = arith.extui %9 : i1 to i32
    %c0_i32_7 = arith.constant 0 : i32
    %11 = arith.cmpi ne, %10, %c0_i32_7 : i32
    scf.if %11 {
      %c0_8 = arith.constant 0 : index
      %c0_9 = arith.constant 0 : index
      %12 = vector.load %arg5[%c0_8, %c0_9] : memref<8x4xf32, #tpu.memory_space<vmem>>, vector<8x4xf32>
      %c0_10 = arith.constant 0 : index
      %c0_11 = arith.constant 0 : index
      %13 = vector.load %arg6[%c0_10, %c0_11] : memref<4x32xf32, #tpu.memory_space<vmem>>, vector<4x32xf32>
      %cst_12 = arith.constant dense<0.000000e+00> : vector<8x32xf32>
      %14 = tpu.matmul %12, %13, %cst_12 {dimension_numbers = #tpu.dot_dimension_numbers<[1], [0], [0], [1], [0, 0, 1, 1], [], []>} : vector<8x4xf32>, vector<4x32xf32>, vector<8x32xf32> -> vector<8x32xf32>
      %c0_13 = arith.constant 0 : index
      %c0_14 = arith.constant 0 : index
      %15 = vector.load %arg8[%c0_13, %c0_14] : memref<8x32xf32, #tpu.memory_space<vmem>>, vector<8x32xf32>
      %16 = arith.addf %15, %14 : vector<8x32xf32>
      %c0_15 = arith.constant 0 : index
      %c0_16 = arith.constant 0 : index
      %17 = vector.load %arg7[%c0_15, %c0_16] : memref<8x32xf32, #tpu.memory_space<vmem>>, vector<8x32xf32>
      tpu.vector_store %arg7[%c0_15, %c0_16], %16 {strides = array<i32>} : memref<8x32xf32, #tpu.memory_space<vmem>>, vector<8x32xf32>,
    } else {
    }
    return
  }
  func.func @transform_0(%arg0: i32, %arg1: i32, %arg2: i32) -> (i32, i32) {
    %c0_i32 = arith.constant 0 : i32
    return %arg0, %arg2 : i32, i32
  }
  func.func @transform_1(%arg0: i32, %arg1: i32, %arg2: i32) -> (i32, i32) {
    %c0_i32 = arith.constant 0 : i32
    return %arg1, %arg2 : i32, i32
  }
  func.func @transform_2(%arg0: i32, %arg1: i32, %arg2: i32) -> (i32, i32) {
    %c0_i32 = arith.constant 0 : i32
    %c0_i32_0 = arith.constant 0 : i32
    return %arg0, %c0_i32 : i32, i32
  }
  func.func @transform_3(%arg0: i32, %arg1: i32, %arg2: i32) -> (i32, i32) {
    %c0_i32 = arith.constant 0 : i32
    %c0_i32_0 = arith.constant 0 : i32
    return %c0_i32, %arg1 : i32, i32
  }
  func.func @transform_4(%arg0: i32, %arg1: i32, %arg2: i32) -> (i32, i32) {
    %c0_i32 = arith.constant 0 : i32
    return %arg0, %arg1 : i32, i32
  }
}

</mosaic_0001>

<bundles_post_ra>
// kernel: tpu_custom_call.1
= control target key start
LH: loop header
LB: loop body
LE: loop exit
PB: predicated region body
PF: predicated region fallthrough
CT: control target
= control target key end

     0   :  { %9 = vsyncpa [#allocation4], 0  ;;  %s1036_s0 = inlined_call_operand.vmem [shape: f32[16,32], index: 0, kind: input, shape index: {}]   ;;  %s1037_s1 = inlined_call_operand.hbm [shape: f32[32,32], index: 1, kind: input, shape index: {}]   ;;  %s1038_s2 = inlined_call_operand.vmem [shape: f32[16,4], index: 2, kind: input, shape index: {}]   ;;  %s1039_s3 = inlined_call_operand.vmem [shape: f32[4,32], index: 3, kind: input, shape index: {}]   ;;  %s1040_s4 = inlined_call_operand.hbm [shape: f32[16,32], index: 4, kind: output, shape index: {}]  }
   0x1   :  { %10 = vsyncpa [#allocation5], 0 }
   0x2   :  { %12 = vsyncpa [#allocation5 + $0x1], 0  ;;  %s875_s15 = smov 0   ;;  %s877_s16 = smov 0  }
   0x3   :  { %s879_s17 = smov 0   ;;  %s881_s18 = smov 0  }
   0x4   :  { %s883_s19 = smov 0   ;;  %s885_s20 = smov 0  }
   0x5 LB: > { %s607_s21 = sadd.s32 4294967295, %s841_s20   ;;  %s608_s22 = sadd.s32 4294967294, %s841_s20   ;;  %s841_s20 = sphi %s885_s20, %s18_s20   ;;  %s837_s19 = sphi %s883_s19, %s1058_s19   ;;  %s833_s18 = sphi %s881_s18, %s1057_s18   ;;  %s829_s17 = sphi %s879_s17, %s1056_s17   ;;  %s825_s16 = sphi %s877_s16, %s1055_s16   ;;  %s821_s15 = sphi %s875_s15, %s1054_s15  }
   0x6   : > { %s37_s23 = sadd.s32 1, %s837_s19  ;;  %s154_s24 = sadd.s32 1, %s829_s17 }
   0x7   : > { %p39_p0 = scmp.ge.s32.totalorder %s37_s23, 2  ;;  %p164_p1 = scmp.ne.s32.totalorder %s829_s17, %s825_s16 }
   0x8   : > { %p165_p2 = scmp.eq.s32.totalorder %s607_s21, 1  ;;  %p170_p3 = scmp.ne.s32.totalorder %s825_s16, %s821_s15 }
   0x9   : > { %s1060_s23 = smov (%p39_p0, %s37_s23), 0  ;;  %p171_p5 = scmp.eq.s32.totalorder %s608_s22, 1 }
   0xa   : > { %p915_p4 = por %p165_p2, %p164_p1  ;;  %s149_s26 = ssub.s32 %s837_s19, %s1060_s23 }
   0xb   : > { %p609_p6 = scmp.ge.s32.totalorder %s841_s20, 1  ;;  %p152_p7 = scmp.eq.s32.totalorder %s149_s26, 0 }
   0xc   : > { %s1045_s25 = scalar_select %p915_p4, 1, 0 }
   0xd   : > { %p922_p8 = por %p171_p5, %p170_p3  ;;  %p178_p9 = scmp.lt.s32.totalorder %s841_s20, 3 }
   0xe   : > { %s928_s28 = scalar_select %p152_p7, %s829_s17, %s154_s24  }
   0xf   : > { %s1046_s27 = scalar_select %p922_p8, 1, 0 }
  0x10   : > { %p930_p10 = pnand %p609_p6, %p178_p9  ;;  %p934_p11 = scmp.eq.s32.totalorder %s607_s21, 0 }
  0x11   : > { %s843_s5 = smov [#allocation3]   ;;  %s731_s10 = scalar_lea.hbm %s1037_s1, 512 }
  0x12   : > { %s1047_s29 = scalar_select %p930_p10, 1, 0 }
  0x13   : > { %s1048_s30 = scalar_select %p934_p11, 1, 0 }
  0x14   : > { %p666_p12 = pneg %p930_p10  ;;  %s194_s6 = sshll.u32 %s843_s5, 4  ;;  %s195_s6 = int_to_ptr.vmem [resolvable:$true] %s194_s6 }
  0x15   : > { %p732_p0 = scmp.ne.s32.totalorder %s1037_s1, %s731_s10  ;;  %p738_p5 = scmp.lt.u32.totalorder %s731_s10, %s1037_s1 }
  0x16   : > { %p942_p13 = pnand %p934_p11, %p666_p12 }
  0x18   : > { %p733_p1 = pneg %p942_p13 }
  0x1a   : > { %p734_p2 = pnand %p733_p1, %p732_p0 }
  0x1c   : > { %p735_p3 = pneg %p734_p2 }
  0x1e   : > { %p740_p6 = pnand %p738_p5, %p735_p3 }
  0x20   : > { %743 = shalt.err (!%p740_p6)
}
  0x21   : > { %s744_s21 = scalar_lea.vmem %s195_s6, 512  ;;  %p752_p8 = scmp.lt.s32.totalorder %s195_s6, %s195_s6 }
  0x22   : > { %p745_p7 = scmp.ne.s32.totalorder %s195_s6, %s744_s21  ;;  %p753_p4 = scmp.lt.s32.totalorder %s744_s21, %s744_s21 }
  0x24   : > { %p747_p9 = pnand %p745_p7, %p733_p1  ;;  %p754_p11 = por %p753_p4, %p752_p8 }
  0x26   : > { %p748_p12 = pneg %p747_p9 }
  0x28   : > { %p755_p10 = pnand %p754_p11, %p748_p12 }
  0x2a   : > { %758 = shalt.err (!%p755_p10)
}
  0x2b   : > { %s844_s22 = smov 128   ;;  %s845_s24 = smov 8  }
  0x2c   : > { %669 = dma.hbm_to_vmem [thread:$0]  (!%p942_p13), %s1037_s1, 512, %s195_s6, [#allocation4], %s844_s22, %s844_s22, %s845_s24  }
  0x2d   : > { %p1050_p0 = scmp.ne.s32.totalorder %s1047_s29, 0 }
  0x2e   : > { %p1051_p2 = scmp.ne.s32.totalorder (!%p1050_p0), %s1048_s30, 0 }
  0x2f   : > { %234 = sbr.rel (%p1050_p0) target bundleno = 310 (0x136), region = 36 }
  0x36   : > { %812 = dma.done.wait (%p1051_p2), [#allocation4], 512  }
  0x37   : > { %814 = vsyncadd (%p1051_p2), [#allocation4], 4294966784  ;;  %v846_v0 = vmov 0.0|0.0   ;;  %vm847_vm0 = vmmov 0   ;;  %v848_v1 = vmov 0.0   ;;  %p270_p4 = scmp.lt.s32.totalorder %s833_s18, 1 }
  0x38   : > { %652 = vmatprep.subr.bf16.mxu0 %v846_v0  ;;  %644 = vmatprep.mubr.msk.f32.mxu0 %vm847_vm0, %v848_v1  ;;  %vm291_vm1 = vcmask 261120   ;;  %vm398_vm2 = vcmask 1043456   ;;  %v287_v2 = vld [vmem:[#allocation3] sm:$0xff]  ;;  %v288_v3 = vld [vmem:[#allocation3 + $0x8] sm:$0xff]  ;;  %vm394_vm4 = vcmask 31744   ;;  %v289_v7 = vld [vmem:[#allocation3 + $0x10] sm:$0xff] }
  0x39   : > { %647 = vmatprep.subr.mxu1 %v848_v1  ;;  %649 = vmatprep.mubr.msk.f32.mxu1 %vm847_vm0, %v848_v1  ;;  %s271_s6 = scalar_select %p270_p4, %s833_s18, 1  ;;  %vm654_vm3 = vmpackc.low %vm291_vm1, %vm291_vm1  ;;  %v653_v4 = vpack.c.bf16 %v288_v3, %v287_v2  ;;  %v393_v5 = vld [vmem:[%s1039_s3] sm:$0xf] }
  0x3a   : > { %648 = vmatpush3.msk.msra.mxu1 %vm398_vm2, %v393_v5  ;;  %v290_v8 = vld [vmem:[#allocation3 + $0x18] sm:$0xff]  ;;  %s267_s14 = sand.u32 1, %s825_s16   ;;  %s626_s22 = sshll.u32 %s833_s18, 7 }
  0x3b   : > { %s616_s29 = sshll.u32 %s271_s6, 3  ;;  %655 = vmatpush3.bf16.xpose.msk.msra.mxu0 %vm654_vm3, %v653_v4  ;;  %v657_v9 = vpack.c.bf16 %v290_v8, %v289_v7  ;;  %s615_s21 = sshll.u32 %s267_s14, 3 }
  0x3c   : > { %s281_s9 = scalar_lea.vmem %s1038_s2, %s616_s29  ;;  %656 = vmatprep.subr.bf16.mxu0 %v846_v0  ;;  %s276_s13 = scalar_lea.vmem %s1036_s0, %s616_s29 }
  0x3d   : > { %v392_v6 = vld [vmem:[%s281_s9] sm:$0xff]  ;;  %s269_s24 = scalar_lea.vmem [#allocation6], %s615_s21  ;;  %s988_s29 = scalar_lea.hbm %s1040_s4, %s626_s22 }
  0x3e   : > { %650 = vmatmul.mubr.msk.f32.vlgmr.msra.gmra.mrb[0].mxu1 %vm394_vm4, %v392_v6  ;;  %v286_v10 = vld [vmem:[%s276_s13] sm:$0xff]  ;;  %s490_s26 = sshll.u32 %s269_s24, 4  ;;  %s476_s7 = scalar_lea.sflag [#allocation5], %s267_s14  ;;  %s990_s26 = int_to_ptr.vmem [resolvable:$true] %s490_s26 }
  0x3f   : > { %s759_s8 = scalar_lea.vmem %s990_s26, 128  ;;  %p1052_p10 = scmp.ne.s32.totalorder %s1045_s25, 0 }
  0x40   : > { %p760_p8 = scmp.ne.s32.totalorder %s990_s26, %s759_s8  ;;  %s849_s18 = smov [#allocation6]  }
  0x41   : > { %s763_s9 = sshll.u32 %s849_s18, 4  ;;  %s764_s9 = int_to_ptr.vmem [resolvable:$false] %s763_s9 }
  0x42   : > { %p761_p11 = pnand %p760_p8, %p1052_p10  ;;  %s765_s30 = scalar_lea.vmem %s764_s9, 256 }
  0x43   : > { %659 = vmatpush3.bf16.xpose.msk.msra.mxu0 %vm654_vm3, %v657_v9  ;;  %p766_p1 = scmp.lt.s32.totalorder %s990_s26, %s764_s9  ;;  %p767_p3 = scmp.lt.s32.totalorder %s765_s30, %s759_s8 }
  0x44   : > { %p762_p13 = pneg %p761_p11 }
  0x45   : > { %p768_p5 = por %p767_p3, %p766_p1 }
  0x47   : > { %p769_p6 = pnand %p768_p5, %p762_p13 }
  0x4a   : > { %645 = vmatmul.mubr.msk.f32.vlgmr.msra.gmra.mrb[0].mxu0 %vm291_vm1, %v286_v10 }
 0x111   : > { %v468_v11 = vpop.f32.mrb[0].mxu1 }
 0x112   : > { %v651_v12 = vpop.f32.mrb[1].mxu1 }
 0x11d   : > { %v373_v13 = vpop.f32.mrb[0].mxu0 }
 0x11e   : > { %381 = vst.msk [vmem:[#allocation2] sm:$0xff] %vm291_vm1, %v373_v13  ;;  %v646_v14 = vpop.f32.mrb[1].mxu0 }
 0x125   : > { %v472_v15 = vld [vmem:[#allocation2] sm:$0xff] }
 0x126   : > { %v473_v16 = vadd.f32 %v472_v15, %v468_v11 }
 0x128   : > { %474 = vst.msk [vmem:[%s269_s24] sm:$0xff] %vm291_vm1, %v473_v16 }
 0x129   : > { %772 = shalt.err (!%p769_p6)
}
 0x12a   : > { %s773_s10 = scalar_lea.hbm %s988_s29, 128  ;;  %s777_s13 = scalar_lea.hbm %s1040_s4, 256 }
 0x12b   : > { %p774_p7 = scmp.ne.s32.totalorder %s988_s29, %s773_s10  ;;  %p778_p0 = scmp.lt.u32.totalorder %s988_s29, %s1040_s4 }
 0x12c   : > { %p779_p2 = scmp.lt.u32.totalorder %s777_s13, %s773_s10  ;;  %p781_p8 = scmp.lt.u32.totalorder %s773_s10, %s988_s29 }
 0x12d   : > { %p775_p9 = pnand %p774_p7, %p1052_p10 }
 0x12e   : > { %p780_p4 = por %p779_p2, %p778_p0 }
 0x12f   : > { %p776_p12 = pneg %p775_p9 }
 0x130   : > { %p782_p11 = por %p781_p8, %p780_p4 }
 0x132   : > { %p783_p13 = pnand %p782_p11, %p776_p12 }
 0x134   : > { %786 = shalt.err (!%p783_p13)
}
 0x135   : > { %664 = dma.vmem_to_hbm [thread:$0]  (%p1052_p10), %s990_s26, 128, %s988_s29, %s476_s7  }
 0x136 PF: > { %p676_p1 = scmp.ge.s32.totalorder %s841_s20, 2  ;;  %s502_s22 = sand.u32 1, %s821_s15  }
 0x137   : > { %p1053_p3 = scmp.ne.s32.totalorder %s1046_s27, 0  ;;  %s503_s24 = scalar_lea.sflag [#allocation5], %s502_s22 }
 0x139   : > { %p671_p5 = pnand %p676_p1, %p1053_p3 }
 0x13b   : > { %816 = dma.done.wait (!%p671_p5), %s503_s24, 128  }
 0x13c   : > { %818 = vsyncadd (!%p671_p5), %s503_s24, 4294967168  ;;  %s18_s20 = sadd.s32 1, %s841_s20   ;;  %s1054_s15 = smov %s825_s16 }
 0x13d   : > { %p15_p6 = scmp.ge.s32.totalorder %s18_s20, 4   ;;  %s1055_s16 = smov %s829_s17 }
 0x13e   : > { %s1056_s17 = smov %s928_s28  ;;  %s1057_s18 = smov %s837_s19 }
 0x13f   : > { %s1058_s19 = smov %s1060_s23  ;;  %17 = sbr.rel (!%p15_p6) target bundleno = 5 (0x5), region = 95 }
 0x146   :  { %508 = vsyncpa [#allocation4], 1 }
 0x147   :  { %510 = vsyncpa [#allocation4 + $0x1], 1 }
 0x148   :  { %511 = vsyncpa [#allocation5], 1 }
 0x149   :  { %513 = vsyncpa [#allocation5 + $0x1], 1 }

</bundles_post_ra>
